<compile_context>
chip_gen: v7x
topology: tpu7x:2x2x1
jax: 0.10.0
libtpu: 0.0.40
codegen_flags: <defaults>
</compile_context>

<pallas_src>
import functools

import jax
import jax.numpy as jnp
from jax.experimental import pallas as pl
from jax.experimental.pallas import tpu as pltpu


# ----------------------------------------------------------------------------
# Helpers
# ----------------------------------------------------------------------------
def _vmem_capacity_bytes():
    """Physical VMEM per core; conservative 64 MiB fallback (v7x-sized)."""
    try:
        info = pltpu.get_tpu_info()
        cap = getattr(info, "vmem_capacity_bytes", None)
        if cap:
            return int(cap)
    except Exception:
        pass
    return 64 * 1024 * 1024


def _choose_q_tile(n, max_tile):
    """Largest divisor of n that is <= max_tile and a multiple of 128 (the
    query tile becomes the LANE dim of the transposed output block).  Falls
    back to the full n (single tile) when no such divisor exists."""
    if n <= max_tile:
        return n
    for t in range(max_tile, 127, -1):
        if n % t == 0 and t % 128 == 0:
            return t
    return n


def _choose_proj_chunk(n, max_chunk=512):
    """Row-chunk for the K/V projection: divisor of n, prefer multiples of 16
    (bf16 sublane packing)."""
    if n <= max_chunk:
        return n
    for t in range(max_chunk, 15, -1):
        if n % t == 0 and t % 16 == 0:
            return t
    for t in range(max_chunk, 1, -1):
        if n % t == 0:
            return t
    return n


def _padded_bytes(rows, cols, itemsize):
    """Bytes of a (rows, cols) VMEM tile padded to (sublane, 128-lane)."""
    sub = 8 if itemsize >= 4 else (16 if itemsize == 2 else 32)
    pr = -(-rows // sub) * sub
    pc = -(-cols // 128) * 128
    return pr * pc * itemsize


def _estimate_vmem_bytes(n, c, dim_head, q_tile, proj_chunk):
    """Padded working-set estimate (blocks, scratch and live temporaries)."""
    bf16, f32 = 2, 4
    est = 0
    est += 2 * _padded_bytes(n, c, bf16)                 # x block, double-buffered
    est += 3 * 2 * _padded_bytes(c, dim_head, bf16)      # per-head wq/wk/wv blocks
    est += 1 * _padded_bytes(n, dim_head, bf16)          # emb (single-buffered)
    est += 2 * _padded_bytes(dim_head, q_tile, f32)      # out block, double-buffered
    est += 2 * _padded_bytes(n, dim_head, bf16)          # K / V scratch
    est += 2 * _padded_bytes(q_tile, n, f32)             # sim + exp(sim) live set
    est += 1 * _padded_bytes(q_tile, n, bf16)            # bf16 copy of P for PV matmul
    est += 2 * _padded_bytes(proj_chunk, dim_head, f32)  # projection chunk temps
    est += 2 * _padded_bytes(q_tile, dim_head, f32)      # q projection + PV accumulator
    return est


def _invariant_spec(block_shape, index_map):
    """Single-buffered BlockSpec for grid-invariant blocks (saves one VMEM
    copy); falls back to the default double-buffered spec if the installed
    Pallas does not accept pipeline_mode."""
    buffered = getattr(pl, "Buffered", None)
    if buffered is not None:
        try:
            return pl.BlockSpec(block_shape, index_map, pipeline_mode=buffered(1))
        except TypeError:
            pass
    return pl.BlockSpec(block_shape, index_map)


# ----------------------------------------------------------------------------
# Pallas kernel: one (batch, head, query-tile) step per grid point.
# ----------------------------------------------------------------------------
def _spectral_attn_kernel(x_ref, wq_ref, wk_ref, wv_ref, emb_ref, o_ref,
                          k_scr, v_scr, *, q_tile, proj_chunk, n_chunks):
    # x_ref:   (1, n, c)        bf16  -- all tokens of this batch element.
    # wq_ref:  (1, c, dim_head) bf16  -- this head's q projection (pre-scaled).
    # wk_ref:  (1, c, dim_head) bf16  -- this head's k projection.
    # wv_ref:  (1, c, dim_head) bf16  -- this head's v projection.
    # emb_ref: (n, dim_head)    bf16  -- AbsPosEmb (shared across heads).
    # o_ref:   (1, dim_head, q_tile) f32 -- transposed output block.
    # k_scr / v_scr: (n, dim_head) bf16 VMEM scratch, persistent across the
    #                query-tile axis for the current (batch, head).
    qi = pl.program_id(2)

    def project_rows(start):
        xc = x_ref[0, pl.ds(start, proj_chunk), :]                 # (chunk, c)
        kc = jnp.dot(xc, wk_ref[0],
                     preferred_element_type=jnp.float32)           # (chunk, d)
        vc = jnp.dot(xc, wv_ref[0],
                     preferred_element_type=jnp.float32)           # (chunk, d)
        kc = kc + emb_ref[pl.ds(start, proj_chunk), :].astype(jnp.float32)
        k_scr[pl.ds(start, proj_chunk), :] = kc.astype(k_scr.dtype)
        v_scr[pl.ds(start, proj_chunk), :] = vc.astype(v_scr.dtype)

    # ---- once per (batch, head): project K/V, fold pos-emb into K ----------
    @pl.when(qi == 0)
    def _():
        if n_chunks == 1:
            project_rows(0)
        else:
            def body(ci, carry):
                project_rows(pl.multiple_of(ci * proj_chunk, proj_chunk))
                return carry
            jax.lax.fori_loop(0, n_chunks, body, 0)

    # ---- per query tile ------------------------------------------------------
    qstart = pl.multiple_of(qi * q_tile, q_tile)
    xq = x_ref[0, pl.ds(qstart, q_tile), :]                        # (tq, c)
    q = jnp.dot(xq, wq_ref[0],
                preferred_element_type=jnp.float32)                # (tq, d)
    q = q.astype(jnp.bfloat16)

    # sim = q @ (k + emb)^T : contract on dim_head.
    dims = (((1,), (1,)), ((), ()))
    sim = jax.lax.dot_general(q, k_scr[...], dims,
                              preferred_element_type=jnp.float32)  # (tq, n) f32
    m = jnp.max(sim, axis=-1, keepdims=True)
    p = jnp.exp(sim - m)                                           # f32
    denom = jnp.sum(p, axis=-1, keepdims=True)                     # (tq, 1)

    out = jnp.dot(p.astype(jnp.bfloat16), v_scr[...],
                  preferred_element_type=jnp.float32)              # (tq, d)
    out = out * pl.reciprocal(denom, approx=True)
    # Store transposed: channels-major so the wrapper needs no NCHW transpose.
    o_ref[0] = out.T.astype(o_ref.dtype)                           # (d, tq)


# ----------------------------------------------------------------------------
# Wrapper: parameter plumbing (trace-time reshapes only) + pallas_call.
# ----------------------------------------------------------------------------
def spectral_attention(fmap, qkv_weight, pos_height, pos_width, *, heads,
                       dim_head):
    """fmap: (b, c, H, W) float32 (NCHW, like PyTorch).
    qkv_weight: (3*heads*dim_head, c) -- 1x1 conv weight with the trailing 1x1
                spatial dims squeezed (PyTorch layout: out_ch x in_ch).
    pos_height, pos_width: (fmap_size, dim_head) AbsPosEmb parameters.
    Returns (b, heads*dim_head, H, W), matching the PyTorch module output.
    """
    b, c, H, W = fmap.shape
    n = H * W
    inner = heads * dim_head
    scale = dim_head ** -0.5

    # ---- tiling decisions derived from this generation's VMEM --------------
    cap = _vmem_capacity_bytes()
    max_tile = 512 if cap >= 96 * 1024 * 1024 else 256     # v5e/v6e vs v7x
    q_tile = _choose_q_tile(n, max_tile)
    proj_chunk = _choose_proj_chunk(n)
    n_chunks = n // proj_chunk
    # Shrink q_tile while the padded working set does not comfortably fit.
    while q_tile < n and q_tile > 128:
        if _estimate_vmem_bytes(n, c, dim_head, q_tile, proj_chunk) <= int(0.8 * cap):
            break
        nt = _choose_q_tile(n, q_tile // 2)
        if nt >= q_tile:
            break
        q_tile = nt
    n_q_tiles = n // q_tile

    # ---- trace-time parameter plumbing --------------------------------------
    # Tokens channels-last, bf16 for the MXU / halved DMA: (b, n, c).
    x = fmap.reshape(b, c, n).transpose(0, 2, 1).astype(jnp.bfloat16)

    # Conv weight -> per-head (heads, c, dim_head) projections; scale folded
    # into wq at trace time (linear in q, identical math).
    def per_head(w):                                      # (inner, c) -> (h, c, d)
        return w.T.reshape(c, heads, dim_head).transpose(1, 0, 2)

    wq = (per_head(qkv_weight[0 * inner:1 * inner]) * scale).astype(jnp.bfloat16)
    wk = per_head(qkv_weight[1 * inner:2 * inner]).astype(jnp.bfloat16)
    wv = per_head(qkv_weight[2 * inner:3 * inner]).astype(jnp.bfloat16)

    # AbsPosEmb (shared across heads), de-tiled and bf16: (n, dim_head).
    emb = (pos_height[:, None, :] + pos_width[None, :, :]
           ).reshape(n, dim_head).astype(jnp.bfloat16)

    kernel = functools.partial(_spectral_attn_kernel, q_tile=q_tile,
                               proj_chunk=proj_chunk, n_chunks=n_chunks)

    est = _estimate_vmem_bytes(n, c, dim_head, q_tile, proj_chunk)
    vmem_limit = max(int(est * 1.2), 32 * 1024 * 1024)
    vmem_limit = min(vmem_limit, max(int(cap * 0.9), 32 * 1024 * 1024))

    out = pl.pallas_call(
        kernel,
        # Channels-major output: (b, inner, n) so only a free reshape remains.
        out_shape=jax.ShapeDtypeStruct((b, inner, n), jnp.float32),
        grid_spec=pltpu.PrefetchScalarGridSpec(
            num_scalar_prefetch=0,
            grid=(b, heads, n_q_tiles),
            in_specs=[
                pl.BlockSpec((1, n, c), lambda bi, hi, qi: (bi, 0, 0)),
                pl.BlockSpec((1, c, dim_head), lambda bi, hi, qi: (hi, 0, 0)),
                pl.BlockSpec((1, c, dim_head), lambda bi, hi, qi: (hi, 0, 0)),
                pl.BlockSpec((1, c, dim_head), lambda bi, hi, qi: (hi, 0, 0)),
                _invariant_spec((n, dim_head), lambda bi, hi, qi: (0, 0)),
            ],
            out_specs=pl.BlockSpec((1, dim_head, q_tile),
                                   lambda bi, hi, qi: (bi, hi, qi)),
            scratch_shapes=[
                pltpu.VMEM((n, dim_head), jnp.bfloat16),   # K (+ pos-emb), this head
                pltpu.VMEM((n, dim_head), jnp.bfloat16),   # V, this head
            ],
        ),
        compiler_params=pltpu.CompilerParams(
            dimension_semantics=("parallel", "parallel", "arbitrary"),
            vmem_limit_bytes=vmem_limit,
        ),
    )(x, wq, wk, wv, emb)

    # (b, inner, n) -> (b, inner, H, W): pure reshape, no transpose/copy.
    return out.reshape(b, inner, H, W)


# ----------------------------------------------------------------------------
# Pure-JAX reference (mirrors the PyTorch forward exactly), for verification.
# ----------------------------------------------------------------------------
def spectral_attention_ref(fmap, qkv_weight, pos_height, pos_width, *, heads,
                           dim_head):
    b, c, H, W = fmap.shape
    n = H * W
    scale = dim_head ** -0.5
    x = fmap.reshape(b, c, n).transpose(0, 2, 1)               # (b, n, c)
    qkv = x @ qkv_weight.T                                     # (b, n, 3*inner)
    q, k, v = jnp.split(qkv, 3, axis=-1)

    def split_heads(t):
        return t.reshape(b, n, heads, dim_head).transpose(0, 2, 1, 3)

    q, k, v = map(split_heads, (q, k, v))
    q = q * scale
    sim = jnp.einsum('bhid,bhjd->bhij', q, k)
    emb = (pos_height[:, None, :] + pos_width[None, :, :]).reshape(n, dim_head)
    sim = sim + jnp.einsum('bhid,jd->bhij', q, emb)
    attn = jax.nn.softmax(sim, axis=-1)
    out = jnp.einsum('bhij,bhjd->bhid', attn, v)
    out = out.reshape(b, heads, H, W, dim_head)
    out = out.transpose(0, 1, 4, 2, 3).reshape(b, heads * dim_head, H, W)
    return out


if __name__ == "__main__":
    # Small shapes consistent with the module defaults (heads=4, dim_head=128).
    B, DIM, FMAP, HEADS, DIM_HEAD = 2, 4, 8, 4, 128
    INNER = HEADS * DIM_HEAD

    key = jax.random.PRNGKey(0)
    k_x, k_w, k_h, k_wd = jax.random.split(key, 4)

    fmap = jax.random.normal(k_x, (B, DIM, FMAP, FMAP), dtype=jnp.float32)
    # nn.Conv2d(dim, inner*3, 1, bias=False) weight: (3*inner, dim) after
    # squeezing the 1x1 spatial dims; deterministic synthetic init.
    qkv_weight = jax.random.normal(k_w, (3 * INNER, DIM),
                                   dtype=jnp.float32) * (DIM ** -0.5)
    scale = DIM_HEAD ** -0.5
    pos_height = jax.random.normal(k_h, (FMAP, DIM_HEAD),
                                   dtype=jnp.float32) * scale
    pos_width = jax.random.normal(k_wd, (FMAP, DIM_HEAD),
                                  dtype=jnp.float32) * scale

    out = spectral_attention(fmap, qkv_weight, pos_height, pos_width,
                             heads=HEADS, dim_head=DIM_HEAD)
    out = jax.block_until_ready(out)

    ref = spectral_attention_ref(fmap, qkv_weight, pos_height, pos_width,
                                 heads=HEADS, dim_head=DIM_HEAD)
    ref = jax.block_until_ready(ref)

    assert out.shape == (B, INNER, FMAP, FMAP), out.shape
    # bf16 MXU operands + approx reciprocal -> relaxed tolerance (f32 softmax
    # statistics and f32 accumulation keep the drift small).
    max_err = float(jnp.max(jnp.abs(out - ref)))
    assert jnp.allclose(out, ref, atol=5e-2, rtol=5e-2), max_err

    # TODO(synk): RelPosEmb (rel_pos_emb=True) path not implemented; the
    # module default (AbsPosEmb) is what this forward pass uses.
    print("KERNEL_OK")
</pallas_src>

<mosaic_0001>
module attributes {stable_mosaic.version = 11 : i64} {
  func.func @_spectral_attn_kernel(%arg0: i32, %arg1: i32, %arg2: i32, %arg3: memref<1x64x4xbf16, #tpu.memory_space<vmem>>, %arg4: memref<1x4x128xbf16, #tpu.memory_space<vmem>>, %arg5: memref<1x4x128xbf16, #tpu.memory_space<vmem>>, %arg6: memref<1x4x128xbf16, #tpu.memory_space<vmem>>, %arg7: memref<64x128xbf16, #tpu.memory_space<vmem>>, %arg8: memref<1x128x64xf32, #tpu.memory_space<vmem>>, %arg9: memref<64x128xbf16, #tpu.memory_space<vmem>>, %arg10: memref<64x128xbf16, #tpu.memory_space<vmem>>) attributes {dimension_semantics = [#tpu.dimension_semantics<parallel>, #tpu.dimension_semantics<parallel>, #tpu.dimension_semantics<arbitrary>], iteration_bounds = array<i64: 2, 4, 1>, scalar_prefetch = 0 : i64, scratch_operands = 2 : i64, tpu.core_type = #tpu.core_type<tc>, window_params = [{transform_indices = @transform_0, window_bounds = array<i64: 1, 64, 4>}, {transform_indices = @transform_1, window_bounds = array<i64: 1, 4, 128>}, {transform_indices = @transform_2, window_bounds = array<i64: 1, 4, 128>}, {transform_indices = @transform_3, window_bounds = array<i64: 1, 4, 128>}, {pipeline_mode = #tpu.pipeline_mode<synchronous>, transform_indices = @transform_4, window_bounds = array<i64: 64, 128>}, {transform_indices = @transform_5, window_bounds = array<i64: 1, 128, 64>}]} {
    %c0_i32 = arith.constant 0 : i32
    %0 = arith.cmpi eq, %arg2, %c0_i32 : i32
    %1 = arith.extui %0 : i1 to i32
    %c0_i32_0 = arith.constant 0 : i32
    %2 = arith.cmpi ne, %1, %c0_i32_0 : i32
    scf.if %2 {
      %c0_16 = arith.constant 0 : index
      %c0_17 = arith.constant 0 : index
      %c0_18 = arith.constant 0 : index
      %31 = vector.load %arg3[%c0_16, %c0_17, %c0_18] : memref<1x64x4xbf16, #tpu.memory_space<vmem>>, vector<1x64x4xbf16>
      %32 = vector.shape_cast %31 : vector<1x64x4xbf16> to vector<64x4xbf16>
      %c0_19 = arith.constant 0 : index
      %c0_20 = arith.constant 0 : index
      %c0_21 = arith.constant 0 : index
      %33 = vector.load %arg5[%c0_19, %c0_20, %c0_21] : memref<1x4x128xbf16, #tpu.memory_space<vmem>>, vector<1x4x128xbf16>
      %34 = vector.shape_cast %33 : vector<1x4x128xbf16> to vector<4x128xbf16>
      %cst_22 = arith.constant dense<0.000000e+00> : vector<64x128xf32>
      %35 = tpu.matmul %32, %34, %cst_22 {dimension_numbers = #tpu.dot_dimension_numbers<[1], [0], [0], [1], [0, 0, 1, 1], [], []>} : vector<64x4xbf16>, vector<4x128xbf16>, vector<64x128xf32> -> vector<64x128xf32>
      %c0_23 = arith.constant 0 : index
      %c0_24 = arith.constant 0 : index
      %c0_25 = arith.constant 0 : index
      %36 = vector.load %arg6[%c0_23, %c0_24, %c0_25] : memref<1x4x128xbf16, #tpu.memory_space<vmem>>, vector<1x4x128xbf16>
      %37 = vector.shape_cast %36 : vector<1x4x128xbf16> to vector<4x128xbf16>
      %cst_26 = arith.constant dense<0.000000e+00> : vector<64x128xf32>
      %38 = tpu.matmul %32, %37, %cst_26 {dimension_numbers = #tpu.dot_dimension_numbers<[1], [0], [0], [1], [0, 0, 1, 1], [], []>} : vector<64x4xbf16>, vector<4x128xbf16>, vector<64x128xf32> -> vector<64x128xf32>
      %c0_27 = arith.constant 0 : index
      %c0_28 = arith.constant 0 : index
      %39 = vector.load %arg7[%c0_27, %c0_28] : memref<64x128xbf16, #tpu.memory_space<vmem>>, vector<64x128xbf16>
      %40 = arith.extf %39 : vector<64x128xbf16> to vector<64x128xf32>
      %41 = arith.addf %35, %40 : vector<64x128xf32>
      %42 = arith.truncf %41 : vector<64x128xf32> to vector<64x128xbf16>
      %c0_29 = arith.constant 0 : index
      %c0_30 = arith.constant 0 : index
      %43 = vector.load %arg9[%c0_29, %c0_30] : memref<64x128xbf16, #tpu.memory_space<vmem>>, vector<64x128xbf16>
      tpu.vector_store %arg9[%c0_29, %c0_30], %42 {strides = array<i32>} : memref<64x128xbf16, #tpu.memory_space<vmem>>, vector<64x128xbf16>,
      %44 = arith.truncf %38 : vector<64x128xf32> to vector<64x128xbf16>
      %c0_31 = arith.constant 0 : index
      %c0_32 = arith.constant 0 : index
      %45 = vector.load %arg10[%c0_31, %c0_32] : memref<64x128xbf16, #tpu.memory_space<vmem>>, vector<64x128xbf16>
      tpu.vector_store %arg10[%c0_31, %c0_32], %44 {strides = array<i32>} : memref<64x128xbf16, #tpu.memory_space<vmem>>, vector<64x128xbf16>,
    } else {
    }
    %c64_i32 = arith.constant 64 : i32
    %3 = arith.muli %arg2, %c64_i32 : i32
    %4 = tpu.assume_multiple %3, 64 : i32
    %c0 = arith.constant 0 : index
    %5 = arith.index_cast %4 : i32 to index
    %c0_1 = arith.constant 0 : index
    %6 = vector.load %arg3[%c0, %5, %c0_1] : memref<1x64x4xbf16, #tpu.memory_space<vmem>>, vector<1x64x4xbf16>
    %7 = vector.shape_cast %6 : vector<1x64x4xbf16> to vector<64x4xbf16>
    %c0_2 = arith.constant 0 : index
    %c0_3 = arith.constant 0 : index
    %c0_4 = arith.constant 0 : index
    %8 = vector.load %arg4[%c0_2, %c0_3, %c0_4] : memref<1x4x128xbf16, #tpu.memory_space<vmem>>, vector<1x4x128xbf16>
    %9 = vector.shape_cast %8 : vector<1x4x128xbf16> to vector<4x128xbf16>
    %cst = arith.constant dense<0.000000e+00> : vector<64x128xf32>
    %10 = tpu.matmul %7, %9, %cst {dimension_numbers = #tpu.dot_dimension_numbers<[1], [0], [0], [1], [0, 0, 1, 1], [], []>} : vector<64x4xbf16>, vector<4x128xbf16>, vector<64x128xf32> -> vector<64x128xf32>
    %11 = arith.truncf %10 : vector<64x128xf32> to vector<64x128xbf16>
    %c0_5 = arith.constant 0 : index
    %c0_6 = arith.constant 0 : index
    %12 = vector.load %arg9[%c0_5, %c0_6] : memref<64x128xbf16, #tpu.memory_space<vmem>>, vector<64x128xbf16>
    %cst_7 = arith.constant dense<0.000000e+00> : vector<64x64xf32>
    %13 = tpu.matmul %11, %12, %cst_7 {dimension_numbers = #tpu.dot_dimension_numbers<[1], [1], [0], [0], [0, 0, 1, 0], [], []>} : vector<64x128xbf16>, vector<64x128xbf16>, vector<64x64xf32> -> vector<64x64xf32>
    %cst_8 = arith.constant dense<0xFF800000> : vector<64xf32>
    %14 = vector.multi_reduction <maximumf>, %13, %cst_8 [1] : vector<64x64xf32> to vector<64xf32>
    %15 = vector.shape_cast %14 : vector<64xf32> to vector<64x1xf32>
    %16 = vector.broadcast %15 : vector<64x1xf32> to vector<64x64xf32>
    %17 = arith.subf %13, %16 : vector<64x64xf32>
    %18 = math.exp %17 : vector<64x64xf32>
    %cst_9 = arith.constant dense<0.000000e+00> : vector<64xf32>
    %19 = vector.multi_reduction <add>, %18, %cst_9 [1] : vector<64x64xf32> to vector<64xf32>
    %20 = vector.shape_cast %19 : vector<64xf32> to vector<64x1xf32>
    %21 = arith.truncf %18 : vector<64x64xf32> to vector<64x64xbf16>
    %c0_10 = arith.constant 0 : index
    %c0_11 = arith.constant 0 : index
    %22 = vector.load %arg10[%c0_10, %c0_11] : memref<64x128xbf16, #tpu.memory_space<vmem>>, vector<64x128xbf16>
    %cst_12 = arith.constant dense<0.000000e+00> : vector<64x128xf32>
    %23 = tpu.matmul %21, %22, %cst_12 {dimension_numbers = #tpu.dot_dimension_numbers<[1], [0], [0], [1], [0, 0, 1, 1], [], []>} : vector<64x64xbf16>, vector<64x128xbf16>, vector<64x128xf32> -> vector<64x128xf32>
    %24 = tpu.reciprocal %20 {approx = true} : vector<64x1xf32> -> vector<64x1xf32>
    %25 = vector.broadcast %24 : vector<64x1xf32> to vector<64x128xf32>
    %26 = arith.mulf %23, %25 : vector<64x128xf32>
    %27 = tpu.transpose %26, [1, 0] : vector<64x128xf32> -> vector<128x64xf32>
    %c0_13 = arith.constant 0 : index
    %c0_14 = arith.constant 0 : index
    %c0_15 = arith.constant 0 : index
    %28 = vector.load %arg8[%c0_13, %c0_14, %c0_15] : memref<1x128x64xf32, #tpu.memory_space<vmem>>, vector<1x128x64xf32>
    %29 = vector.shape_cast %28 : vector<1x128x64xf32> to vector<128x64xf32>
    %30 = vector.shape_cast %27 : vector<128x64xf32> to vector<1x128x64xf32>
    tpu.vector_store %arg8[%c0_13, %c0_14, %c0_15], %30 {strides = array<i32>} : memref<1x128x64xf32, #tpu.memory_space<vmem>>, vector<1x128x64xf32>,
    return
  }
  func.func @transform_0(%arg0: i32, %arg1: i32, %arg2: i32) -> (i32, i32, i32) {
    %c0_i32 = arith.constant 0 : i32
    %c0_i32_0 = arith.constant 0 : i32
    %c0_i32_1 = arith.constant 0 : i32
    return %arg0, %c0_i32, %c0_i32_0 : i32, i32, i32
  }
  func.func @transform_1(%arg0: i32, %arg1: i32, %arg2: i32) -> (i32, i32, i32) {
    %c0_i32 = arith.constant 0 : i32
    %c0_i32_0 = arith.constant 0 : i32
    %c0_i32_1 = arith.constant 0 : i32
    return %arg1, %c0_i32, %c0_i32_0 : i32, i32, i32
  }
  func.func @transform_2(%arg0: i32, %arg1: i32, %arg2: i32) -> (i32, i32, i32) {
    %c0_i32 = arith.constant 0 : i32
    %c0_i32_0 = arith.constant 0 : i32
    %c0_i32_1 = arith.constant 0 : i32
    return %arg1, %c0_i32, %c0_i32_0 : i32, i32, i32
  }
  func.func @transform_3(%arg0: i32, %arg1: i32, %arg2: i32) -> (i32, i32, i32) {
    %c0_i32 = arith.constant 0 : i32
    %c0_i32_0 = arith.constant 0 : i32
    %c0_i32_1 = arith.constant 0 : i32
    return %arg1, %c0_i32, %c0_i32_0 : i32, i32, i32
  }
  func.func @transform_4(%arg0: i32, %arg1: i32, %arg2: i32) -> (i32, i32) {
    %c0_i32 = arith.constant 0 : i32
    %c0_i32_0 = arith.constant 0 : i32
    %c0_i32_1 = arith.constant 0 : i32
    return %c0_i32, %c0_i32_0 : i32, i32
  }
  func.func @transform_5(%arg0: i32, %arg1: i32, %arg2: i32) -> (i32, i32, i32) {
    %c0_i32 = arith.constant 0 : i32
    return %arg0, %arg1, %arg2 : i32, i32, i32
  }
}

</mosaic_0001>

<bundles_post_ra>
// kernel: tpu_custom_call.1
= control target key start
LH: loop header
LB: loop body
LE: loop exit
PB: predicated region body
PF: predicated region fallthrough
CT: control target
= control target key end

     0   :  { %s1383_s18 = smov 0   ;;  %s1385_s19 = smov 0   ;;  %s1546_s0 = inlined_call_operand.vmem [shape: bf16[2,64,4], index: 0, kind: input, shape index: {}]   ;;  %s1547_s1 = inlined_call_operand.vmem [shape: bf16[4,4,128], index: 1, kind: input, shape index: {}]   ;;  %s1548_s2 = inlined_call_operand.vmem [shape: bf16[4,4,128], index: 2, kind: input, shape index: {}]   ;;  %s1549_s3 = inlined_call_operand.vmem [shape: bf16[4,4,128], index: 3, kind: input, shape index: {}]   ;;  %s1550_s4 = inlined_call_operand.vmem [shape: bf16[64,128], index: 4, kind: input, shape index: {}]   ;;  %s1551_s5 = inlined_call_operand.vmem [shape: f32[2,512,64], index: 5, kind: output, shape index: {}]  }
   0x1   :  { %s1387_s20 = smov 0   ;;  %s1389_s21 = smov 0  }
   0x2   :  { %s1391_s22 = smov 0  }
   0x3 LB: > { %s30_s23 = sadd.s32 1, %s1343_s20  ;;  %s34_s24 = sadd.s32 1, %s1347_s21  ;;  %s1351_s22 = sphi %s1391_s22, %s15_s22   ;;  %s1347_s21 = sphi %s1389_s21, %s1555_s21   ;;  %s1343_s20 = sphi %s1387_s20, %s1554_s20   ;;  %s1339_s19 = sphi %s1385_s19, %s1553_s19   ;;  %s1335_s18 = sphi %s1383_s18, %s1552_s18  }
   0x4   : > { %p32_p0 = scmp.ge.s32.totalorder %s30_s23, 4  ;;  %p1081_p1 = scmp.ge.s32.totalorder %s1351_s22, 1 }
   0x5   : > { %p237_p2 = scmp.lt.s32.totalorder %s1351_s22, 9 }
   0x6   : > { %s1557_s23 = smov (%p32_p0, %s30_s23), 0  ;;  %s1559_s24 = smov (!%p32_p0, %s34_s24), %s1347_s21 }
   0x7   : > { %p238_p3 = pnand %p1081_p1, %p237_p2  ;;  %p36_p4 = scmp.ge.s32.totalorder %s1559_s24, 2 }
   0x8   : > { %p289_p5 = scmp.lt.s32.totalorder (!%p238_p3), %s1335_s18, 3  ;;  %p284_p6 = scmp.lt.s32.totalorder (!%p238_p3), %s1339_s19, 1  ;;  %vm362_vm0 = vcmask (!%p238_p3), 1041408   ;;  %vm349_vm1 = vcmask (!%p238_p3), 31744   ;;  %v1133_v14 = vld [vmem:[%s1550_s4 + $0x8] sm:$0xff] (!%p238_p3)   ;;  %v1118_v15 = vld [vmem:[%s1550_s4] sm:$0xff] (!%p238_p3)  }
   0x9   : > { %s1561_s24 = smov (%p36_p4, %s1559_s24), 0  ;;  %241 = sbr.rel (%p238_p3) target bundleno = 1059 (0x423), region = 40 }
   0xa   : > { %v1123_v16 = vunpack.c.l.bf16 (!%p238_p3), %v1133_v14  ;;  %v1124_v17 = vunpack.c.h.bf16 (!%p238_p3), %v1133_v14  ;;  %v1119_v19 = vunpack.c.l.bf16 (!%p238_p3), %v1118_v15  ;;  %v1120_v20 = vunpack.c.h.bf16 (!%p238_p3), %v1118_v15  ;;  %v1135_v23 = vld [vmem:[%s1550_s4 + $0x18] sm:$0xff] (!%p238_p3)   ;;  %v1134_v28 = vld [vmem:[%s1550_s4 + $0x10] sm:$0xff] (!%p238_p3)  }
   0xb   : > { %v1131_v34 = vunpack.c.l.bf16 (!%p238_p3), %v1135_v23  ;;  %v1127_v38 = vunpack.c.l.bf16 (!%p238_p3), %v1134_v28  ;;  %v1132_v40 = vunpack.c.h.bf16 (!%p238_p3), %v1135_v23  ;;  %v1128_v42 = vunpack.c.h.bf16 (!%p238_p3), %v1134_v28 }
   0xc   : > { %vm720_vm2 = vcmask (!%p238_p3), 523264  }
  0x10   : > { %s290_s25 = scalar_select %p289_p5, %s1335_s18, 3 }
  0x11   : > { %s1563_s19 = smov (!%p284_p6, %s1339_s19), 1 }
  0x12   : > { %s1084_s26 = sshll.u32 %s290_s25, 1  ;;  %s1116_s30 = sshll.u32 %s1563_s19, 5 }
  0x13   : > { %s296_s29 = scalar_lea.vmem %s1548_s2, %s1084_s26  ;;  %s1426_s8 = scalar_lea.vmem %s1546_s0, %s1116_s30 }
  0x14   : > { %v327_v0 = vld [vmem:[%s296_s29] sm:$0x3]  ;;  %s300_s11 = scalar_lea.vmem %s1549_s3, %s1084_s26  ;;  %v1274_v3 = vld [vmem:[%s1426_s8 + $0x8] sm:$0xff]   ;;  %s292_s14 = scalar_lea.vmem %s1547_s1, %s1084_s26  ;;  %v1275_v6 = vld [vmem:[%s1426_s8 + $0x10] sm:$0xff]  }
  0x15   : > { %1230 = vmatprep.subr.msk.bf16.mxu1 %vm362_vm0, %v327_v0  ;;  %v448_v1 = vsel %vm362_vm0, %v327_v0, 0  ;;  %v1273_v2 = vld [vmem:[%s1426_s8] sm:$0xff]   ;;  %v1276_v9 = vld [vmem:[%s1426_s8 + $0x18] sm:$0xff]   ;;  %v1278_v11 = vld [vmem:[%s1426_s8 + $0x8] sm:$0xff]   ;;  %s1087_s30 = sshll.u32 %s1335_s18, 4  ;;  %s1088_s6 = sshll.u32 %s1563_s19, 6 }
  0x16   : > { %1178 = vmatpush3.bf16.msra.mxu1 %v448_v1  ;;  %1179 = vmatprep.mubr.msk.bf16.mxu1 %vm349_vm1, %v1273_v2  ;;  %v328_v4 = vld [vmem:[%s300_s11] sm:$0x3]  ;;  %v1279_v12 = vld [vmem:[%s1426_s8 + $0x10] sm:$0xff]   ;;  %v1280_v13 = vld [vmem:[%s1426_s8 + $0x18] sm:$0xff]   ;;  %p304_p7 = scmp.lt.s32.totalorder %s1087_s30, 63 }
  0x17   : > { %1169 = vmatprep.mubr.msk.bf16.mxu0 %vm349_vm1, %v1273_v2  ;;  %1229 = vmatprep.subr.msk.bf16.mxu0 %vm362_vm0, %v328_v4  ;;  %v364_v5 = vsel %vm362_vm0, %v328_v4, 0  ;;  %v544_v7 = vld [vmem:[%s292_s14] sm:$0x3] }
  0x18   : > { %1168 = vmatpush3.bf16.msra.mxu0 %v364_v5  ;;  %v580_v8 = vsel %vm362_vm0, %v544_v7, 0  ;;  %v1277_v10 = vld [vmem:[%s1426_s8] sm:$0xff]   ;;  %s1565_s30 = smov (!%p304_p7, %s1087_s30), 63 }
  0x19   : > { %1180 = vmatmul.mubr.msk.bf16.vlgmr.msra.gmra.mrb[0].mxu1 %vm349_vm1, %v1274_v3  ;;  %1231 = vmatprep.subr.msk.bf16.mxu0 %vm362_vm0, %v544_v7  ;;  %s310_s7 = sadd.s32 %s1088_s6, %s1565_s30 }
  0x1a   : > { %1183 = vmatprep.mubr.msk.bf16.mxu1 %vm349_vm1, %v1275_v6  ;;  %s1089_s8 = sshll.u32 %s310_s7, 3 }
  0x1b   : > { %1170 = vmatmul.mubr.msk.bf16.vlgmr.msra.gmra.mrb[0].mxu0 %vm349_vm1, %v1274_v3  ;;  %s1497_s11 = scalar_lea.vmem %s1551_s5, %s1089_s8 }
  0x1c   : > { %1173 = vmatprep.mubr.msk.bf16.mxu0 %vm349_vm1, %v1275_v6  ;;  %1188 = vmatpush3.bf16.msra.mxu0 %v580_v8 }
  0x21   : > { %1184 = vmatmul.mubr.msk.bf16.gmra.mrb[4].mxu1 %vm349_vm1, %v1276_v9 }
  0x23   : > { %1174 = vmatmul.mubr.msk.bf16.gmra.mrb[4].mxu0 %vm349_vm1, %v1276_v9 }
  0x24   : > { %1189 = vmatprep.mubr.msk.bf16.mxu0 %vm349_vm1, %v1277_v10 }
  0x2b   : > { %1190 = vmatmul.mubr.msk.bf16.vlgmr.msra.gmra.mrb[8].mxu0 %vm349_vm1, %v1278_v11 }
  0x2c   : > { %1193 = vmatprep.mubr.msk.bf16.mxu0 %vm349_vm1, %v1279_v12 }
  0x33   : > { %1194 = vmatmul.mubr.msk.bf16.gmra.mrb[12].mxu0 %vm349_vm1, %v1280_v13 }
  0xec   : > { %v1181_v18 = vpop.f32.mrb[0].mxu1 }
  0xed   : > { %v484_v21 = vpop.f32.mrb[1].mxu1  ;;  %v493_v24 = vadd.f32 %v1181_v18, %v1123_v16 }
  0xee   : > { %v1182_v22 = vpop.f32.mrb[2].mxu1  ;;  %v1171_v27 = vpop.f32.mrb[0].mxu0  ;;  %v485_v29 = vadd.f32 %v1119_v19, %v484_v21 }
  0xef   : > { %v496_v25 = vadd.f32 %v1182_v22, %v1124_v17  ;;  %v487_v26 = vpop.f32.mrb[3].mxu1  ;;  %v400_v31 = vpop.f32.mrb[1].mxu0 }
  0xf0   : > { %v488_v30 = vadd.f32 %v1120_v20, %v487_v26  ;;  %v1172_v33 = vpop.f32.mrb[2].mxu0 }
  0xf1   : > { %v516_v32 = vpack.c.bf16 %v496_v25, %v493_v24  ;;  %v524_v36 = vpack.c.bf16 %v1172_v33, %v1171_v27  ;;  %v403_v37 = vpop.f32.mrb[3].mxu0 }
  0xf2   : > { %v515_v35 = vpack.c.bf16 %v488_v30, %v485_v29  ;;  %v523_v39 = vpack.c.bf16 %v403_v37, %v400_v31 }
  0xf4   : > { %1197 = vmatprep.subr.bf16.mxu1 %v515_v35  ;;  %v1185_v41 = vpop.f32.mrb[4].mxu1  ;;  %1213 = vmatprep.subr.bf16.mxu0 %v523_v39 }
  0xf5   : > { %1198 = vmatpush3.bf16.xpose.msra.mxu1 %v515_v35  ;;  %v509_v43 = vadd.f32 %v1185_v41, %v1131_v34  ;;  %v500_v44 = vpop.f32.mrb[5].mxu1  ;;  %1214 = vmatpush3.bf16.msra.mxu0 %v523_v39 }
  0xf6   : > { %1199 = vmatprep.subr.bf16.mxu1 %v516_v32  ;;  %v501_v45 = vadd.f32 %v1127_v38, %v500_v44  ;;  %v1186_v46 = vpop.f32.mrb[6].mxu1  ;;  %v1175_v49 = vpop.f32.mrb[4].mxu0  ;;  %1215 = vmatprep.subr.bf16.mxu0 %v524_v36 }
  0xf7   : > { %v512_v47 = vadd.f32 %v1186_v46, %v1132_v40  ;;  %v503_v48 = vpop.f32.mrb[7].mxu1  ;;  %v416_v51 = vpop.f32.mrb[5].mxu0 }
  0xf8   : > { %v504_v50 = vadd.f32 %v1128_v42, %v503_v48  ;;  %v1176_v53 = vpop.f32.mrb[6].mxu0 }
  0xf9   : > { %v518_v52 = vpack.c.bf16 %v512_v47, %v509_v43  ;;  %v526_v55 = vpack.c.bf16 %v1176_v53, %v1175_v49  ;;  %v419_v56 = vpop.f32.mrb[7].mxu0  ;;  %1216 = vmatpush3.bf16.msra.mxu0 %v524_v36 }
  0xfa   : > { %v517_v54 = vpack.c.bf16 %v504_v50, %v501_v45  ;;  %v525_v57 = vpack.c.bf16 %v419_v56, %v416_v51 }
  0xfc   : > { %1217 = vmatprep.subr.bf16.mxu0 %v525_v57 }
  0xfd   : > { %1200 = vmatpush3.bf16.xpose.msra.mxu1 %v516_v32  ;;  %1218 = vmatpush3.bf16.msra.mxu0 %v525_v57 }
  0xfe   : > { %1201 = vmatprep.subr.bf16.mxu1 %v517_v54  ;;  %1219 = vmatprep.subr.bf16.mxu0 %v526_v55  ;;  %v1191_v58 = vpop.f32.mrb[8].mxu0 }
  0xff   : > { %v616_v59 = vpop.f32.mrb[9].mxu0 }
 0x100   : > { %v1192_v60 = vpop.f32.mrb[10].mxu0 }
 0x101   : > { %1220 = vmatpush3.bf16.msra.mxu0 %v526_v55  ;;  %v648_v61 = vpack.c.bf16 %v1192_v60, %v1191_v58  ;;  %v619_v62 = vpop.f32.mrb[11].mxu0 }
 0x102   : > { %v647_v63 = vpack.c.bf16 %v619_v62, %v616_v59 }
 0x104   : > { %1205 = vmatprep.mubr.bf16.mxu1 %v647_v63 }
 0x105   : > { %1202 = vmatpush3.bf16.xpose.msra.mxu1 %v517_v54 }
 0x106   : > { %1203 = vmatprep.subr.bf16.mxu1 %v518_v52  ;;  %v1195_v0 = vpop.f32.mrb[12].mxu0 }
 0x107   : > { %v632_v1 = vpop.f32.mrb[13].mxu0 }
 0x108   : > { %v1196_v2 = vpop.f32.mrb[14].mxu0 }
 0x109   : > { %v650_v3 = vpack.c.bf16 %v1196_v2, %v1195_v0  ;;  %v635_v4 = vpop.f32.mrb[15].mxu0 }
 0x10a   : > { %v649_v5 = vpack.c.bf16 %v635_v4, %v632_v1 }
 0x10d   : > { %1204 = vmatpush3.bf16.xpose.msra.mxu1 %v518_v52 }
 0x114   : > { %1206 = vmatmul.mubr.bf16.vlgmr.msra.gmra.mrb[8].mxu1 %v648_v61 }
 0x115   : > { %1209 = vmatprep.mubr.bf16.mxu1 %v649_v5 }
 0x11c   : > { %1210 = vmatmul.mubr.bf16.gmra.mrb[12].mxu1 %v650_v3 }
 0x1e7   : > { %v1207_v6 = vpop.f32.mrb[8].mxu1 }
 0x1e8   : > { %v689_v7 = vpop.f32.mrb[9].mxu1  ;;  %v727_v8 = vsel %vm720_vm2, %v1207_v6, -inf }
 0x1e9   : > { %728 = vmax.xlane.f32.xlu1 %v727_v8  ;;  %v1208_v9 = vpop.f32.mrb[10].mxu1  ;;  %v721_v10 = vsel %vm720_vm2, %v689_v7, -inf }
 0x1ea   : > { %722 = vmax.xlane.f32.xlu0 %v721_v10  ;;  %v692_v11 = vpop.f32.mrb[11].mxu1  ;;  %v730_v12 = vsel %vm720_vm2, %v1208_v9, -inf }
 0x1eb   : > { %v724_v13 = vsel %vm720_vm2, %v692_v11, -inf }
 0x1ed   : > { %731 = vmax.xlane.f32.xlu1 %v730_v12 }
 0x1ee   : > { %725 = vmax.xlane.f32.xlu0 %v724_v13 }
 0x1ef   : > { %v1211_v14 = vpop.f32.mrb[12].mxu1 }
 0x1f0   : > { %v705_v15 = vpop.f32.mrb[13].mxu1  ;;  %v739_v20 = vsel %vm720_vm2, %v1211_v14, -inf }
 0x1f1   : > { %v1212_v16 = vpop.f32.mrb[14].mxu1  ;;  %v733_v17 = vsel %vm720_vm2, %v705_v15, -inf }
 0x1f2   : > { %734 = vmax.xlane.f32.xlu0 %v733_v17  ;;  %v708_v18 = vpop.f32.mrb[15].mxu1  ;;  %v742_v21 = vsel %vm720_vm2, %v1212_v16, -inf }
 0x1f3   : > { %v736_v19 = vsel %vm720_vm2, %v708_v18, -inf }
 0x1f4   : > { %737 = vmax.xlane.f32.xlu1 %v736_v19 }
 0x1f6   : > { %740 = vmax.xlane.f32.xlu0 %v739_v20 }
 0x1f8   : > { %743 = vmax.xlane.f32.xlu1 %v742_v21 }
 0x276   : > { %v729_v22 = vpop.xlane.xlu1 %728 }
 0x277   : > { %v747_v23 = vsub.f32 %v1207_v6, %v729_v22  ;;  %v723_v24 = vpop.xlane.xlu0 %722 }
 0x278   : > { %v745_v25 = vsub.f32 %v689_v7, %v723_v24 }
 0x279   : > { %v757_v26 = vmul.f32 1.442695, %v747_v23 }
 0x27a   : > { %v753_v27 = vmul.f32 1.442695, %v745_v25  ;;  %v732_v28 = vpop.xlane.xlu1 %731 }
 0x27b   : > { %v748_v29 = vsub.f32 %v1208_v9, %v732_v28  ;;  %v726_v30 = vpop.xlane.xlu0 %725 }
 0x27c   : > { %1281 = vpow2.f32 %v753_v27  ;;  %v746_v31 = vsub.f32 %v692_v11, %v726_v30 }
 0x27d   : > { %v759_v32 = vmul.f32 1.442695, %v748_v29  ;;  %1283 = vpow2.f32 %v757_v26 }
 0x27e   : > { %v755_v33 = vmul.f32 1.442695, %v746_v31 }
 0x27f   : > { %1285 = vpow2.f32 %v759_v32  ;;  %v735_v34 = vpop.xlane.xlu0 %734 }
 0x280   : > { %1287 = vpow2.f32 %v755_v33  ;;  %v749_v35 = vsub.f32 %v705_v15, %v735_v34 }
 0x281   : > { %v738_v36 = vpop.xlane.xlu1 %737 }
 0x282   : > { %v761_v37 = vmul.f32 1.442695, %v749_v35  ;;  %v750_v38 = vsub.f32 %v708_v18, %v738_v36 }
 0x283   : > { %v741_v39 = vpop.xlane.xlu0 %740 }
 0x284   : > { %1289 = vpow2.f32 %v761_v37  ;;  %v763_v40 = vmul.f32 1.442695, %v750_v38  ;;  %v751_v41 = vsub.f32 %v1211_v14, %v741_v39 }
 0x285   : > { %v744_v42 = vpop.xlane.xlu1 %743 }
 0x286   : > { %v1282_v43 = vpop.eup %1281  ;;  %1291 = vpow2.f32 %v763_v40  ;;  %v765_v44 = vmul.f32 1.442695, %v751_v41  ;;  %v752_v45 = vsub.f32 %v1212_v16, %v744_v42 }
 0x287   : > { %v769_v46 = vsel %vm720_vm2, %v1282_v43, 0.0  ;;  %v1284_v47 = vpop.eup %1283 }
 0x288   : > { %1293 = vpow2.f32 %v765_v44  ;;  %v767_v48 = vmul.f32 1.442695, %v752_v45  ;;  %770 = vadd.xlane.f32.xlu0 %v769_v46  ;;  %v775_v52 = vsel %vm720_vm2, %v1284_v47, 0.0 }
 0x289   : > { %v1286_v49 = vpop.eup %1285 }
 0x28a   : > { %v1288_v50 = vpop.eup %1287  ;;  %v794_v51 = vpack.c.bf16 %v1286_v49, %v1284_v47  ;;  %1295 = vpow2.f32 %v767_v48  ;;  %v778_v57 = vsel %vm720_vm2, %v1286_v49, 0.0 }
 0x28b   : > { %v772_v53 = vsel %vm720_vm2, %v1288_v50, 0.0  ;;  %v793_v54 = vpack.c.bf16 %v1288_v50, %v1282_v43 }
 0x28c   : > { %776 = vadd.xlane.f32.xlu0 %v775_v52  ;;  %773 = vadd.xlane.f32.xlu1 %v772_v53 }
 0x28d   : > { %1221 = vmatprep.mubr.msk.bf16.mxu0 %vm720_vm2, %v793_v54 }
 0x28e   : > { %v1290_v55 = vpop.eup %1289  ;;  %1222 = vmatmul.mubr.msk.bf16.vlgmr.msra.gmra.mrb[16].mxu0 %vm720_vm2, %v794_v51 }
 0x28f   : > { %v781_v56 = vsel %vm720_vm2, %v1290_v55, 0.0 }
 0x290   : > { %v1292_v58 = vpop.eup %1291  ;;  %782 = vadd.xlane.f32.xlu0 %v781_v56  ;;  %779 = vadd.xlane.f32.xlu1 %v778_v57 }
 0x291   : > { %v795_v59 = vpack.c.bf16 %v1292_v58, %v1290_v55  ;;  %v784_v62 = vsel %vm720_vm2, %v1292_v58, 0.0 }
 0x292   : > { %v1294_v60 = vpop.eup %1293 }
 0x293   : > { %1225 = vmatprep.mubr.msk.bf16.mxu0 %vm720_vm2, %v795_v59  ;;  %v787_v61 = vsel %vm720_vm2, %v1294_v60, 0.0 }
 0x294   : > { %v1296_v63 = vpop.eup %1295  ;;  %788 = vadd.xlane.f32.xlu0 %v787_v61  ;;  %785 = vadd.xlane.f32.xlu1 %v784_v62 }
 0x295   : > { %v796_v0 = vpack.c.bf16 %v1296_v63, %v1294_v60  ;;  %v790_v1 = vsel %vm720_vm2, %v1296_v63, 0.0 }
 0x297   : > { %1226 = vmatmul.mubr.msk.bf16.gmra.mrb[20].mxu0 %vm720_vm2, %v796_v0 }
 0x298   : > { %791 = vadd.xlane.f32.xlu1 %v790_v1 }
 0x315   : > { %v771_v2 = vpop.xlane.xlu0 %770 }
 0x316   : > { %1297 = vrcp.f32 %v771_v2 }
 0x319   : > { %v774_v3 = vpop.xlane.xlu1 %773  ;;  %v777_v4 = vpop.xlane.xlu0 %776 }
 0x31a   : > { %1299 = vrcp.f32 %v774_v3 }
 0x31b   : > { %1301 = vrcp.f32 %v777_v4 }
 0x31d   : > { %v780_v5 = vpop.xlane.xlu1 %779  ;;  %v783_v12 = vpop.xlane.xlu0 %782 }
 0x31e   : > { %1303 = vrcp.f32 %v780_v5 }
 0x31f   : > { %1305 = vrcp.f32 %v783_v12 }
 0x320   : > { %v1298_v7 = vpop.eup %1297 }
 0x321   : > { %v786_v15 = vpop.xlane.xlu1 %785  ;;  %v789_v21 = vpop.xlane.xlu0 %788 }
 0x322   : > { %1307 = vrcp.f32 %v786_v15 }
 0x323   : > { %1309 = vrcp.f32 %v789_v21 }
 0x324   : > { %v1300_v13 = vpop.eup %1299 }
 0x325   : > { %v1302_v16 = vpop.eup %1301  ;;  %v792_v25 = vpop.xlane.xlu1 %791 }
 0x326   : > { %1311 = vrcp.f32 %v792_v25 }
 0x328   : > { %v1304_v23 = vpop.eup %1303 }
 0x329   : > { %v1306_v26 = vpop.eup %1305 }
 0x32c   : > { %v1308_v28 = vpop.eup %1307 }
 0x32d   : > { %v1310_v30 = vpop.eup %1309 }
 0x330   : > { %v1312_v32 = vpop.eup %1311 }
 0x361   : > { %v1223_v6 = vpop.f32.mrb[16].mxu0 }
 0x362   : > { %v847_v8 = vpop.f32.mrb[17].mxu0  ;;  %v888_v18 = vmul.f32 %v1302_v16, %v1223_v6 }
 0x363   : > { %v886_v9 = vmul.f32 %v1298_v7, %v847_v8  ;;  %v1224_v10 = vpop.f32.mrb[18].mxu0 }
 0x364   : > { %v850_v11 = vpop.f32.mrb[19].mxu0  ;;  %v889_v24 = vmul.f32 %v1304_v23, %v1224_v10 }
 0x365   : > { %894 = vxpose.xlu0.b32.start [1/8] (short) %v886_v9, 128  ;;  %v887_v14 = vmul.f32 %v1300_v13, %v850_v11 }
 0x369   : > { %895 = vxpose.xlu0.b32.cont [2/8] (short) %v887_v14, 128 }
 0x36a   : > { %v1227_v17 = vpop.f32.mrb[20].mxu0 }
 0x36b   : > { %v863_v19 = vpop.f32.mrb[21].mxu0  ;;  %v892_v31 = vmul.f32 %v1310_v30, %v1227_v17 }
 0x36c   : > { %v1228_v20 = vpop.f32.mrb[22].mxu0  ;;  %v890_v27 = vmul.f32 %v1306_v26, %v863_v19 }
 0x36d   : > { %896 = vxpose.xlu0.b32.cont [3/8] (short) %v888_v18, 128  ;;  %v866_v22 = vpop.f32.mrb[23].mxu0  ;;  %v893_v33 = vmul.f32 %v1312_v32, %v1228_v20 }
 0x36e   : > { %v891_v29 = vmul.f32 %v1308_v28, %v866_v22 }
 0x371   : > { %897 = vxpose.xlu0.b32.cont [4/8] (short) %v889_v24, 128 }
 0x375   : > { %898 = vxpose.xlu0.b32.cont [5/8] (short) %v890_v27, 128 }
 0x379   : > { %899 = vxpose.xlu0.b32.cont [6/8] (short) %v891_v29, 128 }
 0x37d   : > { %900 = vxpose.xlu0.b32.cont [7/8] (short) %v892_v31, 128 }
 0x381   : > { %901 = vxpose.xlu0.b32.end [8/8] (short) %v893_v33, 128 }
 0x3e5   : > { %v910_v34 = vpop.trf.xlu0 }
 0x3e6   : > { %926 = vst.msk [vmem:[%s1497_s11] sm:$0xff] %vm720_vm2, %v910_v34 }
 0x3e9   : > { %v911_v35 = vpop.trf.xlu0 }
 0x3ea   : > { %927 = vst.msk [vmem:[%s1497_s11 + $0x8] sm:$0xff] %vm720_vm2, %v911_v35 }
 0x3ed   : > { %v912_v36 = vpop.trf.xlu0 }
 0x3ee   : > { %928 = vst.msk [vmem:[%s1497_s11 + $0x10] sm:$0xff] %vm720_vm2, %v912_v36 }
 0x3f1   : > { %v913_v37 = vpop.trf.xlu0 }
 0x3f2   : > { %929 = vst.msk [vmem:[%s1497_s11 + $0x18] sm:$0xff] %vm720_vm2, %v913_v37 }
 0x3f5   : > { %v914_v38 = vpop.trf.xlu0 }
 0x3f6   : > { %930 = vst.msk [vmem:[%s1497_s11 + $0x20] sm:$0xff] %vm720_vm2, %v914_v38 }
 0x3f9   : > { %v915_v39 = vpop.trf.xlu0 }
 0x3fa   : > { %931 = vst.msk [vmem:[%s1497_s11 + $0x28] sm:$0xff] %vm720_vm2, %v915_v39 }
 0x3fd   : > { %v916_v40 = vpop.trf.xlu0 }
 0x3fe   : > { %932 = vst.msk [vmem:[%s1497_s11 + $0x30] sm:$0xff] %vm720_vm2, %v916_v40 }
 0x401   : > { %v917_v41 = vpop.trf.xlu0 }
 0x402   : > { %933 = vst.msk [vmem:[%s1497_s11 + $0x38] sm:$0xff] %vm720_vm2, %v917_v41 }
 0x405   : > { %v918_v42 = vpop.trf.xlu0 }
 0x406   : > { %934 = vst.msk [vmem:[%s1497_s11 + $0x40] sm:$0xff] %vm720_vm2, %v918_v42 }
 0x409   : > { %v919_v43 = vpop.trf.xlu0 }
 0x40a   : > { %935 = vst.msk [vmem:[%s1497_s11 + $0x48] sm:$0xff] %vm720_vm2, %v919_v43 }
 0x40d   : > { %v920_v44 = vpop.trf.xlu0 }
 0x40e   : > { %936 = vst.msk [vmem:[%s1497_s11 + $0x50] sm:$0xff] %vm720_vm2, %v920_v44 }
 0x411   : > { %v921_v45 = vpop.trf.xlu0 }
 0x412   : > { %937 = vst.msk [vmem:[%s1497_s11 + $0x58] sm:$0xff] %vm720_vm2, %v921_v45 }
 0x415   : > { %v922_v46 = vpop.trf.xlu0 }
 0x416   : > { %938 = vst.msk [vmem:[%s1497_s11 + $0x60] sm:$0xff] %vm720_vm2, %v922_v46 }
 0x419   : > { %v923_v47 = vpop.trf.xlu0 }
 0x41a   : > { %939 = vst.msk [vmem:[%s1497_s11 + $0x68] sm:$0xff] %vm720_vm2, %v923_v47 }
 0x41d   : > { %v924_v48 = vpop.trf.xlu0 }
 0x41e   : > { %940 = vst.msk [vmem:[%s1497_s11 + $0x70] sm:$0xff] %vm720_vm2, %v924_v48 }
 0x421   : > { %v925_v49 = vpop.trf.xlu0 }
 0x422   : > { %941 = vst.msk [vmem:[%s1497_s11 + $0x78] sm:$0xff] %vm720_vm2, %v925_v49 }
 0x423 PF: > { %s15_s22 = sadd.s32 1, %s1351_s22   ;;  %s1552_s18 = smov %s1343_s20 }
 0x424   : > { %p12_p8 = scmp.ge.s32.totalorder %s15_s22, 10   ;;  %s1553_s19 = smov %s1347_s21 }
 0x425   : > { %s1554_s20 = smov %s1557_s23  ;;  %s1555_s21 = smov %s1561_s24 }
 0x426   :  { %14 = sbr.rel (!%p12_p8) target bundleno = 3 (0x3), region = 84 }

</bundles_post_ra>
